<compile_context>
chip_gen: v7x
topology: tpu7x:2x2x1
jax: 0.10.0
libtpu: 0.0.40
codegen_flags: <defaults>
</compile_context>

<pallas_src>
import functools

import jax
import jax.numpy as jnp
from jax.experimental import pallas as pl
from jax.experimental.pallas import tpu as pltpu

_LANES = 128
_SUBLANES = 8
_DEFAULT_BLOCK_ROWS = 1024   # (1024, 128) f32 = 512 KiB per input per step
_NSPLIT = 2                  # leading parallel axis (v7x megacore); harmless elsewhere


def _round_up(x, m):
    return -(-x // m) * m


def _focal_kernel(x_ref, t_ref, out_ref, acc_ref, *, gamma, alpha):
    i = pl.program_id(1)

    x = x_ref[...].astype(jnp.float32)
    t = t_ref[...].astype(jnp.float32)

    # Numerically stable BCE-with-logits (matches torch semantics):
    #   bce = max(x, 0) - x*t + log(1 + exp(-|x|))
    bce = jnp.maximum(x, 0.0) - x * t + jnp.log1p(jnp.exp(-jnp.abs(x)))
    one_m_pt = 1.0 - jnp.exp(-bce)          # 1 - pt

    # Specialise the modulating factor on the (static) gamma.
    g = float(gamma)
    if g == 0.0:
        focal = alpha * bce
    else:
        if g == 1.0:
            mod = one_m_pt
        elif g.is_integer() and 2 <= int(g) <= 8:
            mod = one_m_pt
            for _ in range(int(g) - 1):
                mod = mod * one_m_pt
        else:
            mod = jnp.power(one_m_pt, g)
        focal = alpha * mod * bce

    @pl.when(i == 0)
    def _init():
        acc_ref[...] = focal

    @pl.when(i > 0)
    def _accumulate():
        acc_ref[...] += focal

    @pl.when(i == pl.num_programs(1) - 1)
    def _finalize():
        out_ref[0, 0] = jnp.sum(acc_ref[...])


def focal_loss(inputs, targets, gamma=1.0, alpha=1.0,
               block_rows=_DEFAULT_BLOCK_ROWS):
    """Pallas TPU focal loss; returns a scalar float32 (mean over all elems)."""
    assert inputs.shape == targets.shape
    n_valid = int(inputs.size)

    x = inputs.reshape(-1)
    t = targets.reshape(-1)
    if not jnp.issubdtype(x.dtype, jnp.floating):
        x = x.astype(jnp.float32)

    # Rows of 128 lanes, rounded up to the (8, 128) tiling.
    rows_min = _round_up(-(-n_valid // _LANES), _SUBLANES)
    block_rows = max(_SUBLANES, min(int(block_rows), rows_min))
    block_rows = _round_up(block_rows, _SUBLANES)

    n_blocks = -(-rows_min // block_rows)
    nsplit = _NSPLIT if n_blocks >= _NSPLIT else 1
    n_blocks = _round_up(n_blocks, nsplit)
    padded_rows = n_blocks * block_rows
    steps = n_blocks // nsplit

    # Sentinel padding: x -> very negative, t -> 0  =>  bce == 0, (1-pt) == 0,
    # so padded elements contribute exactly 0.  No in-kernel mask needed.
    n_pad = padded_rows * _LANES - n_valid
    if n_pad:
        sentinel = float(jnp.finfo(x.dtype).min) / 2.0
        x = jnp.pad(x, (0, n_pad), constant_values=sentinel)
        t = jnp.pad(t, (0, n_pad), constant_values=0)

    x2 = x.reshape(padded_rows, _LANES)
    t2 = t.reshape(padded_rows, _LANES)

    kernel = functools.partial(_focal_kernel, gamma=float(gamma),
                               alpha=float(alpha))

    partials = pl.pallas_call(
        kernel,
        out_shape=jax.ShapeDtypeStruct((nsplit, 1), jnp.float32),
        grid_spec=pltpu.PrefetchScalarGridSpec(
            num_scalar_prefetch=0,
            grid=(nsplit, steps),
            in_specs=[
                pl.BlockSpec((block_rows, _LANES),
                             lambda c, i: (c * steps + i, 0)),
                pl.BlockSpec((block_rows, _LANES),
                             lambda c, i: (c * steps + i, 0)),
            ],
            out_specs=pl.BlockSpec(
                (1, 1), lambda c, i: (c, 0),
                memory_space=pltpu.MemorySpace.SMEM),
            scratch_shapes=[pltpu.VMEM((block_rows, _LANES), jnp.float32)],
        ),
        compiler_params=pltpu.CompilerParams(
            dimension_semantics=("parallel", "arbitrary"),
        ),
    )(x2, t2)

    return jnp.sum(partials) / jnp.float32(n_valid)


def _focal_loss_ref(inputs, targets, gamma=1.0, alpha=1.0):
    x = inputs.astype(jnp.float32)
    t = targets.astype(jnp.float32)
    bce = jnp.maximum(x, 0.0) - x * t + jnp.log1p(jnp.exp(-jnp.abs(x)))
    pt = jnp.exp(-bce)
    return jnp.mean(alpha * jnp.power(1.0 - pt, gamma) * bce)


if __name__ == "__main__":
    key = jax.random.PRNGKey(0)
    k_x, k_t, k_x2, k_t2 = jax.random.split(key, 4)

    # NCHW-shaped logits and binary targets (as the torch module expects).
    x = jax.random.normal(k_x, (2, 4, 16, 16), dtype=jnp.float32)
    t = (jax.random.uniform(k_t, (2, 4, 16, 16)) > 0.5).astype(jnp.float32)

    # 1) Default gamma/alpha (gamma == 1 fast path).
    loss = jax.block_until_ready(focal_loss(x, t, gamma=1.0, alpha=1.0))
    ref = _focal_loss_ref(x, t, gamma=1.0, alpha=1.0)
    assert jnp.allclose(loss, ref, rtol=1e-5, atol=1e-6), (loss, ref)

    # 2) Exercise the split (parallel-axis) path with small blocks.
    loss_s = jax.block_until_ready(
        focal_loss(x, t, gamma=1.0, alpha=1.0, block_rows=8))
    assert jnp.allclose(loss_s, ref, rtol=1e-5, atol=1e-6), (loss_s, ref)

    # 3) Ragged size (sentinel padding) + integer gamma>1 + alpha != 1.
    xr = jax.random.normal(k_x2, (3, 5, 17, 19), dtype=jnp.float32)
    tr = (jax.random.uniform(k_t2, (3, 5, 17, 19)) > 0.5).astype(jnp.float32)
    loss_r = jax.block_until_ready(focal_loss(xr, tr, gamma=2.0, alpha=0.25))
    ref_r = _focal_loss_ref(xr, tr, gamma=2.0, alpha=0.25)
    assert jnp.allclose(loss_r, ref_r, rtol=1e-5, atol=1e-6), (loss_r, ref_r)

    print("KERNEL_OK")
</pallas_src>

<mosaic_0001>
module attributes {stable_mosaic.version = 11 : i64} {
  func.func @_focal_kernel(%arg0: i32, %arg1: i32, %arg2: memref<16x128xf32, #tpu.memory_space<vmem>>, %arg3: memref<16x128xf32, #tpu.memory_space<vmem>>, %arg4: memref<1x1xf32, #tpu.memory_space<smem>>, %arg5: memref<16x128xf32, #tpu.memory_space<vmem>>) attributes {dimension_semantics = [#tpu.dimension_semantics<parallel>, #tpu.dimension_semantics<arbitrary>], iteration_bounds = array<i64: 1, 1>, scalar_prefetch = 0 : i64, scratch_operands = 1 : i64, tpu.core_type = #tpu.core_type<tc>, window_params = [{transform_indices = @transform_0, window_bounds = array<i64: 16, 128>}, {transform_indices = @transform_1, window_bounds = array<i64: 16, 128>}, {transform_indices = @transform_2, window_bounds = array<i64: 1, 1>}]} {
    %c0 = arith.constant 0 : index
    %c0_0 = arith.constant 0 : index
    %0 = vector.load %arg2[%c0, %c0_0] : memref<16x128xf32, #tpu.memory_space<vmem>>, vector<16x128xf32>
    %c0_1 = arith.constant 0 : index
    %c0_2 = arith.constant 0 : index
    %1 = vector.load %arg3[%c0_1, %c0_2] : memref<16x128xf32, #tpu.memory_space<vmem>>, vector<16x128xf32>
    %cst = arith.constant 0.000000e+00 : f32
    %2 = vector.broadcast %cst : f32 to vector<16x128xf32>
    %3 = arith.maximumf %0, %2 : vector<16x128xf32>
    %4 = arith.mulf %0, %1 : vector<16x128xf32>
    %5 = arith.subf %3, %4 : vector<16x128xf32>
    %6 = math.absf %0 : vector<16x128xf32>
    %cst_3 = arith.constant 0.000000e+00 : f32
    %7 = vector.broadcast %cst_3 : f32 to vector<16x128xf32>
    %8 = arith.subf %7, %6 : vector<16x128xf32>
    %9 = math.exp %8 : vector<16x128xf32>
    %10 = math.log1p %9 : vector<16x128xf32>
    %11 = arith.addf %5, %10 : vector<16x128xf32>
    %cst_4 = arith.constant 0.000000e+00 : f32
    %12 = vector.broadcast %cst_4 : f32 to vector<16x128xf32>
    %13 = arith.subf %12, %11 : vector<16x128xf32>
    %14 = math.exp %13 : vector<16x128xf32>
    %cst_5 = arith.constant 1.000000e+00 : f32
    %15 = vector.broadcast %cst_5 : f32 to vector<16x128xf32>
    %16 = arith.subf %15, %14 : vector<16x128xf32>
    %cst_6 = arith.constant 1.000000e+00 : f32
    %17 = vector.broadcast %cst_6 : f32 to vector<16x128xf32>
    %18 = arith.mulf %17, %16 : vector<16x128xf32>
    %19 = arith.mulf %18, %11 : vector<16x128xf32>
    %c0_i32 = arith.constant 0 : i32
    %20 = arith.cmpi eq, %arg1, %c0_i32 : i32
    %21 = arith.extui %20 : i1 to i32
    %c0_i32_7 = arith.constant 0 : i32
    %22 = arith.cmpi ne, %21, %c0_i32_7 : i32
    scf.if %22 {
      %c0_12 = arith.constant 0 : index
      %c0_13 = arith.constant 0 : index
      %29 = vector.load %arg5[%c0_12, %c0_13] : memref<16x128xf32, #tpu.memory_space<vmem>>, vector<16x128xf32>
      tpu.vector_store %arg5[%c0_12, %c0_13], %19 {strides = array<i32>} : memref<16x128xf32, #tpu.memory_space<vmem>>, vector<16x128xf32>,
    } else {
    }
    %c0_i32_8 = arith.constant 0 : i32
    %23 = arith.cmpi sgt, %arg1, %c0_i32_8 : i32
    %24 = arith.extui %23 : i1 to i32
    %c0_i32_9 = arith.constant 0 : i32
    %25 = arith.cmpi ne, %24, %c0_i32_9 : i32
    scf.if %25 {
      %c0_12 = arith.constant 0 : index
      %c0_13 = arith.constant 0 : index
      %29 = vector.load %arg5[%c0_12, %c0_13] : memref<16x128xf32, #tpu.memory_space<vmem>>, vector<16x128xf32>
      %30 = arith.addf %29, %19 : vector<16x128xf32>
      %c0_14 = arith.constant 0 : index
      %c0_15 = arith.constant 0 : index
      %31 = vector.load %arg5[%c0_14, %c0_15] : memref<16x128xf32, #tpu.memory_space<vmem>>, vector<16x128xf32>
      tpu.vector_store %arg5[%c0_14, %c0_15], %30 {strides = array<i32>} : memref<16x128xf32, #tpu.memory_space<vmem>>, vector<16x128xf32>,
    } else {
    }
    %c0_i32_10 = arith.constant 0 : i32
    %26 = arith.cmpi eq, %arg1, %c0_i32_10 : i32
    %27 = arith.extui %26 : i1 to i32
    %c0_i32_11 = arith.constant 0 : i32
    %28 = arith.cmpi ne, %27, %c0_i32_11 : i32
    scf.if %28 {
      %c0_12 = arith.constant 0 : index
      %c0_13 = arith.constant 0 : index
      %29 = vector.load %arg5[%c0_12, %c0_13] : memref<16x128xf32, #tpu.memory_space<vmem>>, vector<16x128xf32>
      %30 = vector.shape_cast %29 : vector<16x128xf32> to vector<1x16x128xf32>
      %cst_14 = arith.constant dense<0.000000e+00> : vector<1xf32>
      %31 = vector.multi_reduction <add>, %30, %cst_14 [1, 2] : vector<1x16x128xf32> to vector<1xf32>
      %32 = vector.shape_cast %31 : vector<1xf32> to vector<1x1x1xf32>
      %33 = vector.extract %32[0, 0, 0] : f32 from vector<1x1x1xf32>
      %c0_15 = arith.constant 0 : index
      %c0_16 = arith.constant 0 : index
      %34 = memref.load %arg4[%c0_15, %c0_16] : memref<1x1xf32, #tpu.memory_space<smem>>
      memref.store %33, %arg4[%c0_15, %c0_16] : memref<1x1xf32, #tpu.memory_space<smem>>
    } else {
    }
    return
  }
  func.func @transform_0(%arg0: i32, %arg1: i32) -> (i32, i32) {
    %c1_i32 = arith.constant 1 : i32
    %0 = arith.muli %arg0, %c1_i32 : i32
    %1 = arith.addi %0, %arg1 : i32
    %c0_i32 = arith.constant 0 : i32
    %c0_i32_0 = arith.constant 0 : i32
    return %1, %c0_i32 : i32, i32
  }
  func.func @transform_1(%arg0: i32, %arg1: i32) -> (i32, i32) {
    %c1_i32 = arith.constant 1 : i32
    %0 = arith.muli %arg0, %c1_i32 : i32
    %1 = arith.addi %0, %arg1 : i32
    %c0_i32 = arith.constant 0 : i32
    %c0_i32_0 = arith.constant 0 : i32
    return %1, %c0_i32 : i32, i32
  }
  func.func @transform_2(%arg0: i32, %arg1: i32) -> (i32, i32) {
    %c0_i32 = arith.constant 0 : i32
    %c0_i32_0 = arith.constant 0 : i32
    return %arg0, %c0_i32 : i32, i32
  }
}

</mosaic_0001>

<bundles_post_ra>
// kernel: tpu_custom_call.1
= control target key start
LH: loop header
LB: loop body
LE: loop exit
PB: predicated region body
PF: predicated region fallthrough
CT: control target
= control target key end

     0   :  { %7 = vsyncpa [#allocation4], 0  ;;  %s283_s0 = inlined_call_operand.hbm [shape: f32[16,128], index: 0, kind: input, shape index: {}]   ;;  %s284_s1 = inlined_call_operand.hbm [shape: f32[16,128], index: 1, kind: input, shape index: {}]   ;;  %s285_s2 = inlined_call_operand.hbm [shape: f32[1,1], index: 2, kind: output, shape index: {}]  }
   0x1   :  { %8 = vsyncpa [#allocation7], 0 }
   0x2   :  { %9 = vsyncpa [#allocation5], 0  ;;  %s227_s9 = smov [#allocation3]   ;;  %s167_s13 = scalar_lea.hbm %s283_s0, 256 }
   0x3   :  { %s19_s10 = sshll.u32 %s227_s9, 4  ;;  %p168_p0 = scmp.ne.s32.totalorder %s283_s0, %s167_s13  ;;  %s20_s10 = int_to_ptr.vmem [resolvable:$true] %s19_s10 }
   0x4   :  { %p171_p1 = scmp.lt.u32.totalorder %s167_s13, %s283_s0 }
   0x6   :  { %p173_p2 = pnand %p171_p1, %p168_p0 }
   0x8   :  { %176 = shalt.err (!%p173_p2)
}
   0x9   :  { %s177_s18 = scalar_lea.vmem %s20_s10, 256  ;;  %p182_p4 = scmp.lt.s32.totalorder %s20_s10, %s20_s10 }
   0xa   :  { %p178_p3 = scmp.ne.s32.totalorder %s20_s10, %s177_s18  ;;  %p183_p5 = scmp.lt.s32.totalorder %s177_s18, %s177_s18 }
   0xc   :  { %p184_p6 = por %p183_p5, %p182_p4 }
   0xe   :  { %p185_p7 = pnand %p184_p6, %p178_p3 }
  0x10   :  { %188 = shalt.err (!%p185_p7)
}
  0x11   :  { %s228_s19 = smov 128   ;;  %s229_s20 = smov 8  }
  0x12   :  { %25 = dma.hbm_to_vmem [thread:$0]  %s283_s0, 256, %s20_s10, [#allocation4], %s228_s19, %s228_s19, %s229_s20  }
  0x13   :  { %s230_s23 = smov [#allocation6]   ;;  %s189_s27 = scalar_lea.hbm %s284_s1, 256 }
  0x14   :  { %s35_s24 = sshll.u32 %s230_s23, 4  ;;  %p190_p8 = scmp.ne.s32.totalorder %s284_s1, %s189_s27  ;;  %s36_s24 = int_to_ptr.vmem [resolvable:$true] %s35_s24 }
  0x15   :  { %p193_p9 = scmp.lt.u32.totalorder %s189_s27, %s284_s1 }
  0x17   :  { %p195_p10 = pnand %p193_p9, %p190_p8 }
  0x19   :  { %198 = shalt.err (!%p195_p10)
}
  0x1a   :  { %s199_s4 = scalar_lea.vmem %s36_s24, 256  ;;  %p204_p12 = scmp.lt.s32.totalorder %s36_s24, %s36_s24 }
  0x1b   :  { %p200_p11 = scmp.ne.s32.totalorder %s36_s24, %s199_s4  ;;  %p205_p13 = scmp.lt.s32.totalorder %s199_s4, %s199_s4 }
  0x1d   :  { %p206_p0 = por %p205_p13, %p204_p12 }
  0x1f   :  { %p207_p1 = pnand %p206_p0, %p200_p11 }
  0x21   :  { %210 = shalt.err (!%p207_p1)
}
  0x22   :  { %41 = dma.hbm_to_vmem [thread:$0]  %s284_s1, 256, %s36_s24, [#allocation7], %s228_s19, %s228_s19, %s229_s20  }
  0x23   :  { %221 = dma.done.wait [#allocation4], 256  }
  0x24   :  { %222 = vsyncadd [#allocation4], 4294967040 }
  0x25   :  { %223 = dma.done.wait [#allocation7], 256  }
  0x26   :  { %224 = vsyncadd [#allocation7], 4294967040  ;;  %v52_v0 = vld [vmem:[#allocation3] sm:$0xff]  ;;  %v53_v1 = vld [vmem:[#allocation3 + $0x8] sm:$0xff]  ;;  %s211_s8 = scalar_lea.hbm %s285_s2, 16 }
  0x27   :  { %v62_v2 = vand.u32 2147483647, %v52_v0  ;;  %v63_v3 = vand.u32 2147483647, %v53_v1  ;;  %v54_v14 = vld [vmem:[#allocation6] sm:$0xff]  ;;  %v55_v15 = vld [vmem:[#allocation6 + $0x8] sm:$0xff]  ;;  %p212_p2 = scmp.ne.s32.totalorder %s285_s2, %s211_s8  ;;  %p215_p3 = scmp.lt.u32.totalorder %s211_s8, %s285_s2 }
  0x28   :  { %v56_v17 = vmax.f32 %v52_v0, 0.0  ;;  %v58_v18 = vmul.f32 %v54_v14, %v52_v0  ;;  %v57_v21 = vmax.f32 %v53_v1, 0.0  ;;  %v59_v22 = vmul.f32 %v55_v15, %v53_v1 }
  0x29   :  { %v64_v4 = vsub.f32 0.0, %v62_v2  ;;  %v65_v5 = vsub.f32 0.0, %v63_v3  ;;  %p217_p4 = pnand %p215_p3, %p212_p2 }
  0x2a   :  { %v60_v26 = vsub.f32 %v56_v17, %v58_v18  ;;  %v61_v29 = vsub.f32 %v57_v21, %v59_v22 }
  0x2b   :  { %v66_v6 = vmul.f32 1.442695, %v64_v4  ;;  %v68_v7 = vmul.f32 1.442695, %v65_v5 }
  0x2d   :  { %155 = vpow2.f32 %v66_v6 }
  0x2e   :  { %157 = vpow2.f32 %v68_v7 }
  0x37   :  { %v156_v8 = vpop.eup %155 }
  0x38   :  { %v158_v9 = vpop.eup %157  ;;  %v70_v10 = vadd.f32 1.0, %v156_v8  ;;  %v73_v12 = vmul.f32 -0.5, %v156_v8  ;;  %v76_v19 = vand.u32 2147483647, %v156_v8 }
  0x39   :  { %v79_v11 = vadd.f32 1.0, %v158_v9  ;;  %v82_v13 = vmul.f32 -0.5, %v158_v9  ;;  %v85_v23 = vand.u32 2147483647, %v158_v9 }
  0x3a   :  { %159 = vlog2.f32 %v70_v10  ;;  %v74_v16 = vadd.f32 1.0, %v73_v12  ;;  %vm77_vm0 = vcmp.lt.f32.partialorder %v76_v19, 0.0004427343 }
  0x3b   :  { %161 = vlog2.f32 %v79_v11  ;;  %v83_v20 = vadd.f32 1.0, %v82_v13  ;;  %vm86_vm1 = vcmp.lt.f32.partialorder %v85_v23, 0.0004427343 }
  0x3c   :  { %v75_v24 = vmul.f32 %v156_v8, %v74_v16 }
  0x3d   :  { %v84_v27 = vmul.f32 %v158_v9, %v83_v20 }
  0x44   :  { %v160_v25 = vpop.eup %159 }
  0x45   :  { %v162_v28 = vpop.eup %161  ;;  %v72_v30 = vmul.f32 0.6931472, %v160_v25 }
  0x46   :  { %v81_v31 = vmul.f32 0.6931472, %v162_v28 }
  0x47   :  { %v78_v32 = vsel %vm77_vm0, %v75_v24, %v72_v30 }
  0x48   :  { %v87_v33 = vsel %vm86_vm1, %v84_v27, %v81_v31  ;;  %v88_v34 = vadd.f32 %v78_v32, %v60_v26 }
  0x49   :  { %v89_v35 = vadd.f32 %v87_v33, %v61_v29 }
  0x4a   :  { %v90_v36 = vsub.f32 0.0, %v88_v34 }
  0x4b   :  { %v91_v37 = vsub.f32 0.0, %v89_v35 }
  0x4c   :  { %v92_v38 = vmul.f32 1.442695, %v90_v36 }
  0x4d   :  { %v94_v39 = vmul.f32 1.442695, %v91_v37 }
  0x4e   :  { %163 = vpow2.f32 %v92_v38 }
  0x4f   :  { %165 = vpow2.f32 %v94_v39 }
  0x58   :  { %v164_v40 = vpop.eup %163 }
  0x59   :  { %v166_v41 = vpop.eup %165  ;;  %v96_v42 = vsub.f32 1.0, %v164_v40 }
  0x5a   :  { %v97_v43 = vsub.f32 1.0, %v166_v41 }
  0x5b   :  { %v98_v44 = vmul.f32 %v96_v42, %v88_v34 }
  0x5c   :  { %v99_v45 = vmul.f32 %v97_v43, %v89_v35 }
  0x5e   :  { %v121_v46 = vadd.f32 %v99_v45, %v98_v44 }
  0x60   :  { %122 = vadd.xlane.f32.xlu0 %v121_v46 }
  0xed   :  { %v123_v47 = vpop.xlane.xlu0 %122 }
  0xee   :  { %v124_v48 = vrot.slane %v123_v47, 4 }
  0xf0   :  { %v125_v49 = vadd.f32 %v124_v48, %v123_v47 }
  0xf2   :  { %v126_v50 = vrot.slane %v125_v49, 2 }
  0xf4   :  { %v127_v51 = vadd.f32 %v126_v50, %v125_v49 }
  0xf6   :  { %v128_v52 = vrot.slane %v127_v51, 1 }
  0xf8   :  { %v129_v53 = vadd.f32 %v128_v52, %v127_v51 }
  0xfa   :  { %148 = vpush %v129_v53 }
 0x12b   :  { %s149_s1 = spop %148 }
 0x12c   :  { %132 = sst [smem:[#allocation8]] %s149_s1 }
 0x12d   :  { %220 = shalt.err (!%p217_p4)
}
 0x12e   :  { %s231_s13 = smov [#allocation8]  }
 0x12f   :  { %140 = dma.smem_to_hbm %s231_s13, 16, %s285_s2, [#allocation5]  }
 0x130   :  { %225 = dma.done.wait [#allocation5], 16  }
 0x131   :  { %226 = vsyncadd [#allocation5], 4294967280 }
 0x132   :  { %144 = sfence }
 0x133   :  { %145 = vsyncpa [#allocation4], 1 }
 0x134   :  { %146 = vsyncpa [#allocation7], 1 }
 0x135   :  { %147 = vsyncpa [#allocation5], 1 }

</bundles_post_ra>
